<compile_context>
chip_gen: v6e
topology: v6e:2x2x1
jax: 0.10.0
libtpu: 0.0.40
codegen_flags: <defaults>
</compile_context>

<pallas_src>
import functools

import jax
import jax.numpy as jnp
from jax.experimental import pallas as pl
from jax.experimental.pallas import tpu as pltpu


def _comm_stack_kernel(*refs, num_layers, normalize):
    """All CDL layers fused, fully resident in VMEM.

    refs layout:
      inputs : z, a, (w_0, b_0), ..., (w_{L-1}, b_{L-1})
      outputs: (p_t_0, s_0, x_tilde_0, a_tilde_0), ..., per layer
    """
    z_ref, a_ref = refs[0], refs[1]
    w_refs = [refs[2 + 2 * l] for l in range(num_layers)]
    b_refs = [refs[2 + 2 * l + 1] for l in range(num_layers)]
    out_refs = refs[2 + 2 * num_layers:]
    pt_refs = out_refs[0::4]   # (C_l, n_l)  P^T, lane-dense store
    s_refs = out_refs[1::4]    # (1, n_l)    int32 hard labels
    xt_refs = out_refs[2::4]   # (C_l, F)    pooled features
    at_refs = out_refs[3::4]   # (C_l, C_l)  pooled adjacency

    x = z_ref[...]             # current node features, f32
    adj = a_ref[...]           # current adjacency, f32

    for l in range(num_layers):
        n = x.shape[0]
        c = w_refs[l].shape[1]

        # bf16 operands for the MXU, f32 accumulation everywhere.
        x_bf = x.astype(jnp.bfloat16)
        adj_bf = adj.astype(jnp.bfloat16)
        w_bf = w_refs[l][...].astype(jnp.bfloat16)
        bias = b_refs[l][...]                                     # (1, c) f32

        # ---- soft assignment: P = softmax(X W + b, axis=1) ---------------
        logits = jnp.dot(x_bf, w_bf,
                         preferred_element_type=jnp.float32) + bias   # (n, c)
        m = jnp.max(logits, axis=-1, keepdims=True)
        e = jnp.exp(logits - m)
        denom = jnp.sum(e, axis=-1, keepdims=True)
        p = e * pl.reciprocal(denom, approx=True)                     # (n, c)

        # ---- lane-dense P writeback: store P^T so n sits on the lane axis.
        # (single XLU transpose; the XLU slot is otherwise idle here)
        p_t = p.T                                                     # (c, n)
        pt_refs[l][...] = p_t

        # ---- hard labels: S = argmax over communities (first index on ties)
        col_idx = jax.lax.broadcasted_iota(jnp.int32, (c, n), 0).astype(jnp.float32)
        mx = jnp.max(p_t, axis=0, keepdims=True)                      # (1, n)
        s = jnp.min(jnp.where(p_t == mx, col_idx, jnp.float32(c)),
                    axis=0, keepdims=True)                            # (1, n)
        s_refs[l][...] = s.astype(jnp.int32)

        # ---- pooled features / adjacency via transposed-LHS dot_general --
        p_bf = p.astype(jnp.bfloat16)
        dn_t = (((0,), (0,)), ((), ()))                               # contract node axis
        x_tilde = jax.lax.dot_general(p_bf, x_bf, dn_t,
                                      preferred_element_type=jnp.float32)   # (c, F)
        ap = jnp.dot(adj_bf, p_bf,
                     preferred_element_type=jnp.float32)                     # (n, c)
        a_tilde = jax.lax.dot_general(p_bf, ap.astype(jnp.bfloat16), dn_t,
                                      preferred_element_type=jnp.float32)    # (c, c)

        if normalize:
            deg = jnp.sum(a_tilde, axis=-1, keepdims=True)            # (c, 1)
            d_inv_sqrt = jnp.where(deg > 0.0,
                                   jax.lax.rsqrt(jnp.abs(deg) + 1e-12), 0.0)
            a_tilde = d_inv_sqrt * a_tilde * d_inv_sqrt.T

        xt_refs[l][...] = x_tilde
        at_refs[l][...] = a_tilde

        # next layer consumes the pooled graph (stays in vregs/VMEM, no HBM hop)
        x, adj = x_tilde, a_tilde


def _run_comm_stack(Z, A, params, normalize):
    """Build and run the single fused pallas_call for the whole CDL stack."""
    num_layers = len(params)
    N, F = Z.shape

    inputs = [Z, A]
    out_shapes = []
    n_cur = N
    for (W, b) in params:
        c = W.shape[1]
        inputs.extend([W, b])
        out_shapes.extend([
            jax.ShapeDtypeStruct((c, n_cur), jnp.float32),   # P^T (lane-dense)
            jax.ShapeDtypeStruct((1, n_cur), jnp.int32),     # S
            jax.ShapeDtypeStruct((c, F), jnp.float32),       # X_tilde
            jax.ShapeDtypeStruct((c, c), jnp.float32),       # A_tilde
        ])
        n_cur = c

    kernel = functools.partial(_comm_stack_kernel,
                               num_layers=num_layers, normalize=normalize)

    # Gridless call + whole-array VMEM specs: single-buffered, no pipelining.
    vmem_spec = lambda: pl.BlockSpec(memory_space=pltpu.MemorySpace.VMEM)
    return pl.pallas_call(
        kernel,
        out_shape=tuple(out_shapes),
        in_specs=[vmem_spec() for _ in inputs],
        out_specs=tuple(vmem_spec() for _ in out_shapes),
        compiler_params=pltpu.CompilerParams(
            vmem_limit_bytes=64 * 1024 * 1024),   # safe on v5e/v6e/v7x
    )(*inputs)


@functools.partial(jax.jit, static_argnames=("normalize",))
def comm_classifier_forward(Z, A, params, *, normalize=True):
    num_layers = len(params)
    outs = _run_comm_stack(Z, A, params, normalize)

    X_list, A_list, P_list, S_list = [], [], [], []
    for l in range(num_layers):
        p_t, s2d, x_t, a_t = outs[4 * l: 4 * l + 4]
        P_list.append(p_t.T)      # back to torch (nodes, comms) layout
        S_list.append(s2d[0])     # (n_l,) int32
        X_list.append(x_t)
        A_list.append(a_t)
    # mirrors the original [X_last, A_last, X_list, A_list, P_list, S_list]
    return [X_list[-1], A_list[-1], X_list, A_list, P_list, S_list]


class CommClassiferPallas:
    """JAX/Pallas port of CommClassifer (stack of CDL layers, fused kernel)."""

    def __init__(self, in_nodes, in_attrib, comm_sizes=(16, 8), normalize=True,
                 key=jax.random.PRNGKey(0)):
        self.in_nodes = in_nodes
        self.in_attrib = in_attrib
        self.comm_sizes = tuple(comm_sizes)
        self.normalize = normalize

        # deterministic parameter init (nn.Linear-style uniform)
        params = []
        feats = in_attrib
        for comms in self.comm_sizes:
            key, kw, kb = jax.random.split(key, 3)
            bound = 1.0 / (feats ** 0.5)
            W = jax.random.uniform(kw, (feats, comms), jnp.float32, -bound, bound)
            b = jax.random.uniform(kb, (1, comms), jnp.float32, -bound, bound)
            params.append((W, b))
            feats = in_attrib   # CDL keeps the attribute dim: X_tilde is (C, in_attrib)
        self.params = tuple(params)

    def __call__(self, Z, A):
        return comm_classifier_forward(Z, A, self.params, normalize=self.normalize)


def _reference_forward(Z, A, params, normalize=True):
    """Pure-JAX f32 reference (same math, no bf16 / approx reciprocal)."""
    X, Adj = Z, A
    X_list, A_list, P_list, S_list = [], [], [], []
    for (W, b) in params:
        P = jax.nn.softmax(X @ W + b, axis=1)
        S = jnp.argmax(P, axis=1)
        X_t = P.T @ X
        A_t = P.T @ Adj @ P
        if normalize:
            deg = jnp.sum(A_t, axis=-1, keepdims=True)
            d = jnp.where(deg > 0.0, 1.0 / jnp.sqrt(jnp.abs(deg) + 1e-12), 0.0)
            A_t = d * A_t * d.T
        X_list.append(X_t); A_list.append(A_t); P_list.append(P); S_list.append(S)
        X, Adj = X_t, A_t
    return [X_list[-1], A_list[-1], X_list, A_list, P_list, S_list]


if __name__ == "__main__":
    key = jax.random.PRNGKey(0)
    k_z, k_a, k_param = jax.random.split(key, 3)

    N, F = 64, 32                       # in_nodes, in_attrib (small demo shapes)
    comm_sizes = (16, 8)

    Z = jax.random.normal(k_z, (N, F), jnp.float32)
    A_rand = jax.random.uniform(k_a, (N, N), jnp.float32)
    A = ((A_rand + A_rand.T) * 0.5 > 0.7).astype(jnp.float32)
    A = A + jnp.eye(N, dtype=jnp.float32)        # symmetric adjacency + self loops

    model = CommClassiferPallas(in_nodes=N, in_attrib=F,
                                comm_sizes=comm_sizes, normalize=True,
                                key=k_param)

    out = jax.block_until_ready(model(Z, A))
    X_last, A_last, X_list, A_list, P_list, S_list = out

    # shape checks
    assert X_last.shape == (comm_sizes[-1], F)
    assert A_last.shape == (comm_sizes[-1], comm_sizes[-1])
    assert P_list[0].shape == (N, comm_sizes[0])
    assert P_list[1].shape == (comm_sizes[0], comm_sizes[1])
    assert S_list[0].shape == (N,)
    assert S_list[1].shape == (comm_sizes[0],)

    # numerical check vs pure-JAX f32 reference (bf16 MXU inputs -> small drift)
    rX, rA, rXl, rAl, rPl, rSl = _reference_forward(Z, A, model.params, normalize=True)
    pairs = ([(X_last, rX), (A_last, rA)]
             + list(zip(X_list, rXl)) + list(zip(A_list, rAl)) + list(zip(P_list, rPl)))
    for got, want in pairs:
        assert got.shape == want.shape
        assert bool(jnp.allclose(got, want, rtol=1e-1, atol=1e-1)), "mismatch vs reference"

    # hard labels are exactly consistent with the returned soft assignments
    for P, S in zip(P_list, S_list):
        assert bool(jnp.array_equal(S, jnp.argmax(P, axis=1)))

    assert all(bool(jnp.all(jnp.isfinite(t))) for t in [X_last, A_last] + P_list)

    print("KERNEL_OK")
</pallas_src>

<mosaic_0001>
module attributes {stable_mosaic.version = 11 : i64} {
  func.func @_comm_stack_kernel(%arg0: memref<64x32xf32, #tpu.memory_space<vmem>>, %arg1: memref<64x64xf32, #tpu.memory_space<vmem>>, %arg2: memref<32x16xf32, #tpu.memory_space<vmem>>, %arg3: memref<1x16xf32, #tpu.memory_space<vmem>>, %arg4: memref<32x8xf32, #tpu.memory_space<vmem>>, %arg5: memref<1x8xf32, #tpu.memory_space<vmem>>, %arg6: memref<16x64xf32, #tpu.memory_space<vmem>>, %arg7: memref<1x64xi32, #tpu.memory_space<vmem>>, %arg8: memref<16x32xf32, #tpu.memory_space<vmem>>, %arg9: memref<16x16xf32, #tpu.memory_space<vmem>>, %arg10: memref<8x16xf32, #tpu.memory_space<vmem>>, %arg11: memref<1x16xi32, #tpu.memory_space<vmem>>, %arg12: memref<8x32xf32, #tpu.memory_space<vmem>>, %arg13: memref<8x8xf32, #tpu.memory_space<vmem>>) attributes {dimension_semantics = [], scalar_prefetch = 0 : i64, scratch_operands = 0 : i64, tpu.core_type = #tpu.core_type<tc>} {
    %c0 = arith.constant 0 : index
    %c0_0 = arith.constant 0 : index
    %0 = vector.load %arg0[%c0, %c0_0] : memref<64x32xf32, #tpu.memory_space<vmem>>, vector<64x32xf32>
    %c0_1 = arith.constant 0 : index
    %c0_2 = arith.constant 0 : index
    %1 = vector.load %arg1[%c0_1, %c0_2] : memref<64x64xf32, #tpu.memory_space<vmem>>, vector<64x64xf32>
    %2 = arith.truncf %0 : vector<64x32xf32> to vector<64x32xbf16>
    %3 = arith.truncf %1 : vector<64x64xf32> to vector<64x64xbf16>
    %c0_3 = arith.constant 0 : index
    %c0_4 = arith.constant 0 : index
    %4 = vector.load %arg2[%c0_3, %c0_4] : memref<32x16xf32, #tpu.memory_space<vmem>>, vector<32x16xf32>
    %5 = arith.truncf %4 : vector<32x16xf32> to vector<32x16xbf16>
    %c0_5 = arith.constant 0 : index
    %c0_6 = arith.constant 0 : index
    %6 = vector.load %arg3[%c0_5, %c0_6] : memref<1x16xf32, #tpu.memory_space<vmem>>, vector<1x16xf32>
    %cst = arith.constant dense<0.000000e+00> : vector<64x16xf32>
    %7 = tpu.matmul %2, %5, %cst {dimension_numbers = #tpu.dot_dimension_numbers<[1], [0], [0], [1], [0, 0, 1, 1], [], []>} : vector<64x32xbf16>, vector<32x16xbf16>, vector<64x16xf32> -> vector<64x16xf32>
    %8 = vector.broadcast %6 : vector<1x16xf32> to vector<64x16xf32>
    %9 = arith.addf %7, %8 : vector<64x16xf32>
    %cst_7 = arith.constant dense<0xFF800000> : vector<64xf32>
    %10 = vector.multi_reduction <maximumf>, %9, %cst_7 [1] : vector<64x16xf32> to vector<64xf32>
    %11 = vector.shape_cast %10 : vector<64xf32> to vector<64x1xf32>
    %12 = vector.broadcast %11 : vector<64x1xf32> to vector<64x16xf32>
    %13 = arith.subf %9, %12 : vector<64x16xf32>
    %14 = math.exp %13 : vector<64x16xf32>
    %cst_8 = arith.constant dense<0.000000e+00> : vector<64xf32>
    %15 = vector.multi_reduction <add>, %14, %cst_8 [1] : vector<64x16xf32> to vector<64xf32>
    %16 = vector.shape_cast %15 : vector<64xf32> to vector<64x1xf32>
    %17 = tpu.reciprocal %16 {approx = true} : vector<64x1xf32> -> vector<64x1xf32>
    %18 = vector.broadcast %17 : vector<64x1xf32> to vector<64x16xf32>
    %19 = arith.mulf %14, %18 : vector<64x16xf32>
    %20 = tpu.transpose %19, [1, 0] : vector<64x16xf32> -> vector<16x64xf32>
    %c0_9 = arith.constant 0 : index
    %c0_10 = arith.constant 0 : index
    %21 = vector.load %arg6[%c0_9, %c0_10] : memref<16x64xf32, #tpu.memory_space<vmem>>, vector<16x64xf32>
    tpu.vector_store %arg6[%c0_9, %c0_10], %20 {strides = array<i32>} : memref<16x64xf32, #tpu.memory_space<vmem>>, vector<16x64xf32>,
    %22 = tpu.iota {dimensions = array<i32: 0>} : vector<16x64xi32>
    %23 = arith.sitofp %22 : vector<16x64xi32> to vector<16x64xf32>
    %cst_11 = arith.constant dense<0xFF800000> : vector<64xf32>
    %24 = vector.multi_reduction <maximumf>, %20, %cst_11 [0] : vector<16x64xf32> to vector<64xf32>
    %25 = vector.shape_cast %24 : vector<64xf32> to vector<1x64xf32>
    %26 = vector.broadcast %25 : vector<1x64xf32> to vector<16x64xf32>
    %27 = arith.cmpf oeq, %20, %26 : vector<16x64xf32>
    %cst_12 = arith.constant 1.600000e+01 : f32
    %28 = vector.broadcast %cst_12 : f32 to vector<16x64xf32>
    %29 = arith.select %27, %23, %28 : vector<16x64xi1>, vector<16x64xf32>
    %cst_13 = arith.constant dense<0x7F800000> : vector<64xf32>
    %30 = vector.multi_reduction <minimumf>, %29, %cst_13 [0] : vector<16x64xf32> to vector<64xf32>
    %31 = vector.shape_cast %30 : vector<64xf32> to vector<1x64xf32>
    %32 = arith.fptosi %31 : vector<1x64xf32> to vector<1x64xi32>
    %c0_14 = arith.constant 0 : index
    %c0_15 = arith.constant 0 : index
    %33 = vector.load %arg7[%c0_14, %c0_15] : memref<1x64xi32, #tpu.memory_space<vmem>>, vector<1x64xi32>
    tpu.vector_store %arg7[%c0_14, %c0_15], %32 {strides = array<i32>} : memref<1x64xi32, #tpu.memory_space<vmem>>, vector<1x64xi32>,
    %34 = arith.truncf %19 : vector<64x16xf32> to vector<64x16xbf16>
    %cst_16 = arith.constant dense<0.000000e+00> : vector<16x32xf32>
    %35 = tpu.matmul %34, %2, %cst_16 {dimension_numbers = #tpu.dot_dimension_numbers<[0], [0], [1], [1], [0, 1, 1, 1], [], []>} : vector<64x16xbf16>, vector<64x32xbf16>, vector<16x32xf32> -> vector<16x32xf32>
    %cst_17 = arith.constant dense<0.000000e+00> : vector<64x16xf32>
    %36 = tpu.matmul %3, %34, %cst_17 {dimension_numbers = #tpu.dot_dimension_numbers<[1], [0], [0], [1], [0, 0, 1, 1], [], []>} : vector<64x64xbf16>, vector<64x16xbf16>, vector<64x16xf32> -> vector<64x16xf32>
    %37 = arith.truncf %36 : vector<64x16xf32> to vector<64x16xbf16>
    %cst_18 = arith.constant dense<0.000000e+00> : vector<16x16xf32>
    %38 = tpu.matmul %34, %37, %cst_18 {dimension_numbers = #tpu.dot_dimension_numbers<[0], [0], [1], [1], [0, 1, 1, 1], [], []>} : vector<64x16xbf16>, vector<64x16xbf16>, vector<16x16xf32> -> vector<16x16xf32>
    %cst_19 = arith.constant dense<0.000000e+00> : vector<16xf32>
    %39 = vector.multi_reduction <add>, %38, %cst_19 [1] : vector<16x16xf32> to vector<16xf32>
    %40 = vector.shape_cast %39 : vector<16xf32> to vector<16x1xf32>
    %cst_20 = arith.constant 0.000000e+00 : f32
    %41 = vector.broadcast %cst_20 : f32 to vector<16x1xf32>
    %42 = arith.cmpf ogt, %40, %41 : vector<16x1xf32>
    %43 = math.absf %40 : vector<16x1xf32>
    %cst_21 = arith.constant 9.99999996E-13 : f32
    %44 = vector.broadcast %cst_21 : f32 to vector<16x1xf32>
    %45 = arith.addf %43, %44 : vector<16x1xf32>
    %46 = math.rsqrt %45 : vector<16x1xf32>
    %cst_22 = arith.constant 0.000000e+00 : f32
    %47 = vector.broadcast %cst_22 : f32 to vector<16x1xf32>
    %48 = arith.select %42, %46, %47 : vector<16x1xi1>, vector<16x1xf32>
    %49 = vector.broadcast %48 : vector<16x1xf32> to vector<16x16xf32>
    %50 = arith.mulf %49, %38 : vector<16x16xf32>
    %51 = tpu.transpose %48, [1, 0] : vector<16x1xf32> -> vector<1x16xf32>
    %52 = vector.broadcast %51 : vector<1x16xf32> to vector<16x16xf32>
    %53 = arith.mulf %50, %52 : vector<16x16xf32>
    %c0_23 = arith.constant 0 : index
    %c0_24 = arith.constant 0 : index
    %54 = vector.load %arg8[%c0_23, %c0_24] : memref<16x32xf32, #tpu.memory_space<vmem>>, vector<16x32xf32>
    tpu.vector_store %arg8[%c0_23, %c0_24], %35 {strides = array<i32>} : memref<16x32xf32, #tpu.memory_space<vmem>>, vector<16x32xf32>,
    %c0_25 = arith.constant 0 : index
    %c0_26 = arith.constant 0 : index
    %55 = vector.load %arg9[%c0_25, %c0_26] : memref<16x16xf32, #tpu.memory_space<vmem>>, vector<16x16xf32>
    tpu.vector_store %arg9[%c0_25, %c0_26], %53 {strides = array<i32>} : memref<16x16xf32, #tpu.memory_space<vmem>>, vector<16x16xf32>,
    %56 = arith.truncf %35 : vector<16x32xf32> to vector<16x32xbf16>
    %57 = arith.truncf %53 : vector<16x16xf32> to vector<16x16xbf16>
    %c0_27 = arith.constant 0 : index
    %c0_28 = arith.constant 0 : index
    %58 = vector.load %arg4[%c0_27, %c0_28] : memref<32x8xf32, #tpu.memory_space<vmem>>, vector<32x8xf32>
    %59 = arith.truncf %58 : vector<32x8xf32> to vector<32x8xbf16>
    %c0_29 = arith.constant 0 : index
    %c0_30 = arith.constant 0 : index
    %60 = vector.load %arg5[%c0_29, %c0_30] : memref<1x8xf32, #tpu.memory_space<vmem>>, vector<1x8xf32>
    %cst_31 = arith.constant dense<0.000000e+00> : vector<16x8xf32>
    %61 = tpu.matmul %56, %59, %cst_31 {dimension_numbers = #tpu.dot_dimension_numbers<[1], [0], [0], [1], [0, 0, 1, 1], [], []>} : vector<16x32xbf16>, vector<32x8xbf16>, vector<16x8xf32> -> vector<16x8xf32>
    %62 = vector.broadcast %60 : vector<1x8xf32> to vector<16x8xf32>
    %63 = arith.addf %61, %62 : vector<16x8xf32>
    %cst_32 = arith.constant dense<0xFF800000> : vector<16xf32>
    %64 = vector.multi_reduction <maximumf>, %63, %cst_32 [1] : vector<16x8xf32> to vector<16xf32>
    %65 = vector.shape_cast %64 : vector<16xf32> to vector<16x1xf32>
    %66 = vector.broadcast %65 : vector<16x1xf32> to vector<16x8xf32>
    %67 = arith.subf %63, %66 : vector<16x8xf32>
    %68 = math.exp %67 : vector<16x8xf32>
    %cst_33 = arith.constant dense<0.000000e+00> : vector<16xf32>
    %69 = vector.multi_reduction <add>, %68, %cst_33 [1] : vector<16x8xf32> to vector<16xf32>
    %70 = vector.shape_cast %69 : vector<16xf32> to vector<16x1xf32>
    %71 = tpu.reciprocal %70 {approx = true} : vector<16x1xf32> -> vector<16x1xf32>
    %72 = vector.broadcast %71 : vector<16x1xf32> to vector<16x8xf32>
    %73 = arith.mulf %68, %72 : vector<16x8xf32>
    %74 = tpu.transpose %73, [1, 0] : vector<16x8xf32> -> vector<8x16xf32>
    %c0_34 = arith.constant 0 : index
    %c0_35 = arith.constant 0 : index
    %75 = vector.load %arg10[%c0_34, %c0_35] : memref<8x16xf32, #tpu.memory_space<vmem>>, vector<8x16xf32>
    tpu.vector_store %arg10[%c0_34, %c0_35], %74 {strides = array<i32>} : memref<8x16xf32, #tpu.memory_space<vmem>>, vector<8x16xf32>,
    %76 = tpu.iota {dimensions = array<i32: 0>} : vector<8x16xi32>
    %77 = arith.sitofp %76 : vector<8x16xi32> to vector<8x16xf32>
    %cst_36 = arith.constant dense<0xFF800000> : vector<16xf32>
    %78 = vector.multi_reduction <maximumf>, %74, %cst_36 [0] : vector<8x16xf32> to vector<16xf32>
    %79 = vector.shape_cast %78 : vector<16xf32> to vector<1x16xf32>
    %80 = vector.broadcast %79 : vector<1x16xf32> to vector<8x16xf32>
    %81 = arith.cmpf oeq, %74, %80 : vector<8x16xf32>
    %cst_37 = arith.constant 8.000000e+00 : f32
    %82 = vector.broadcast %cst_37 : f32 to vector<8x16xf32>
    %83 = arith.select %81, %77, %82 : vector<8x16xi1>, vector<8x16xf32>
    %cst_38 = arith.constant dense<0x7F800000> : vector<16xf32>
    %84 = vector.multi_reduction <minimumf>, %83, %cst_38 [0] : vector<8x16xf32> to vector<16xf32>
    %85 = vector.shape_cast %84 : vector<16xf32> to vector<1x16xf32>
    %86 = arith.fptosi %85 : vector<1x16xf32> to vector<1x16xi32>
    %c0_39 = arith.constant 0 : index
    %c0_40 = arith.constant 0 : index
    %87 = vector.load %arg11[%c0_39, %c0_40] : memref<1x16xi32, #tpu.memory_space<vmem>>, vector<1x16xi32>
    tpu.vector_store %arg11[%c0_39, %c0_40], %86 {strides = array<i32>} : memref<1x16xi32, #tpu.memory_space<vmem>>, vector<1x16xi32>,
    %88 = arith.truncf %73 : vector<16x8xf32> to vector<16x8xbf16>
    %cst_41 = arith.constant dense<0.000000e+00> : vector<8x32xf32>
    %89 = tpu.matmul %88, %56, %cst_41 {dimension_numbers = #tpu.dot_dimension_numbers<[0], [0], [1], [1], [0, 1, 1, 1], [], []>} : vector<16x8xbf16>, vector<16x32xbf16>, vector<8x32xf32> -> vector<8x32xf32>
    %cst_42 = arith.constant dense<0.000000e+00> : vector<16x8xf32>
    %90 = tpu.matmul %57, %88, %cst_42 {dimension_numbers = #tpu.dot_dimension_numbers<[1], [0], [0], [1], [0, 0, 1, 1], [], []>} : vector<16x16xbf16>, vector<16x8xbf16>, vector<16x8xf32> -> vector<16x8xf32>
    %91 = arith.truncf %90 : vector<16x8xf32> to vector<16x8xbf16>
    %cst_43 = arith.constant dense<0.000000e+00> : vector<8x8xf32>
    %92 = tpu.matmul %88, %91, %cst_43 {dimension_numbers = #tpu.dot_dimension_numbers<[0], [0], [1], [1], [0, 1, 1, 1], [], []>} : vector<16x8xbf16>, vector<16x8xbf16>, vector<8x8xf32> -> vector<8x8xf32>
    %cst_44 = arith.constant dense<0.000000e+00> : vector<8xf32>
    %93 = vector.multi_reduction <add>, %92, %cst_44 [1] : vector<8x8xf32> to vector<8xf32>
    %94 = vector.shape_cast %93 : vector<8xf32> to vector<8x1xf32>
    %cst_45 = arith.constant 0.000000e+00 : f32
    %95 = vector.broadcast %cst_45 : f32 to vector<8x1xf32>
    %96 = arith.cmpf ogt, %94, %95 : vector<8x1xf32>
    %97 = math.absf %94 : vector<8x1xf32>
    %cst_46 = arith.constant 9.99999996E-13 : f32
    %98 = vector.broadcast %cst_46 : f32 to vector<8x1xf32>
    %99 = arith.addf %97, %98 : vector<8x1xf32>
    %100 = math.rsqrt %99 : vector<8x1xf32>
    %cst_47 = arith.constant 0.000000e+00 : f32
    %101 = vector.broadcast %cst_47 : f32 to vector<8x1xf32>
    %102 = arith.select %96, %100, %101 : vector<8x1xi1>, vector<8x1xf32>
    %103 = vector.broadcast %102 : vector<8x1xf32> to vector<8x8xf32>
    %104 = arith.mulf %103, %92 : vector<8x8xf32>
    %105 = tpu.transpose %102, [1, 0] : vector<8x1xf32> -> vector<1x8xf32>
    %106 = vector.broadcast %105 : vector<1x8xf32> to vector<8x8xf32>
    %107 = arith.mulf %104, %106 : vector<8x8xf32>
    %c0_48 = arith.constant 0 : index
    %c0_49 = arith.constant 0 : index
    %108 = vector.load %arg12[%c0_48, %c0_49] : memref<8x32xf32, #tpu.memory_space<vmem>>, vector<8x32xf32>
    tpu.vector_store %arg12[%c0_48, %c0_49], %89 {strides = array<i32>} : memref<8x32xf32, #tpu.memory_space<vmem>>, vector<8x32xf32>,
    %c0_50 = arith.constant 0 : index
    %c0_51 = arith.constant 0 : index
    %109 = vector.load %arg13[%c0_50, %c0_51] : memref<8x8xf32, #tpu.memory_space<vmem>>, vector<8x8xf32>
    tpu.vector_store %arg13[%c0_50, %c0_51], %107 {strides = array<i32>} : memref<8x8xf32, #tpu.memory_space<vmem>>, vector<8x8xf32>,
    return
  }
}

</mosaic_0001>

<bundles_post_ra>
// kernel: comm_classifier_forward.1
= control target key start
LH: loop header
LB: loop body
LE: loop exit
PB: predicated region body
PF: predicated region fallthrough
CT: control target
= control target key end

     0   :  { %19 = vsyncpa [#allocation3], 0  ;;  %s1639_s0 = inlined_call_operand.vmem [shape: f32[64,32], index: 0, kind: input, shape index: {}]   ;;  %s1640_s1 = inlined_call_operand.vmem [shape: f32[64,64], index: 1, kind: input, shape index: {}]   ;;  %s1641_s2 = inlined_call_operand.vmem [shape: f32[32,16], index: 2, kind: input, shape index: {}]   ;;  %s1642_s3 = inlined_call_operand.vmem [shape: f32[1,16], index: 3, kind: input, shape index: {}]   ;;  %s1643_s4 = inlined_call_operand.vmem [shape: f32[32,8], index: 4, kind: input, shape index: {}]   ;;  %s1644_s5 = inlined_call_operand.vmem [shape: f32[1,8], index: 5, kind: input, shape index: {}]   ;;  %s1645_s6 = inlined_call_operand.hbm [shape: f32[16,64], index: 6, kind: output, shape index: {0}]   ;;  %s1646_s7 = inlined_call_operand.hbm [shape: s32[1,64], index: 7, kind: output, shape index: {1}]   ;;  %s1647_s8 = inlined_call_operand.hbm [shape: f32[16,32], index: 8, kind: output, shape index: {2}]   ;;  %s1648_s9 = inlined_call_operand.hbm [shape: f32[16,16], index: 9, kind: output, shape index: {3}]   ;;  %s1649_s10 = inlined_call_operand.hbm [shape: f32[8,16], index: 10, kind: output, shape index: {4}]   ;;  %s1650_s11 = inlined_call_operand.hbm [shape: s32[1,16], index: 11, kind: output, shape index: {5}]   ;;  %s1651_s12 = inlined_call_operand.vmem [shape: f32[8,32], index: 12, kind: output, shape index: {6}]   ;;  %s1652_s13 = inlined_call_operand.vmem [shape: f32[8,8], index: 13, kind: output, shape index: {7}]  }
   0x1   :  { %20 = vsyncpa [#allocation5], 0 }
   0x2   :  { %21 = vsyncpa [#allocation8], 0  ;;  %v62_v0 = vld [vmem:[%s1641_s2 + $0x10] sm:$0xff]  ;;  %v63_v1 = vld [vmem:[%s1641_s2 + $0x18] sm:$0xff]  ;;  %vm73_vm0 = vcmask 261120  }
   0x3   :  { %v60_v2 = vld [vmem:[%s1641_s2] sm:$0xff]  ;;  %v65_v3 = vpack.c.bf16 %v63_v1, %v62_v0  ;;  %v61_v4 = vld [vmem:[%s1641_s2 + $0x8] sm:$0xff]  ;;  %v38_v9 = vld [vmem:[%s1639_s0 + $0x10] sm:$0xff] }
   0x4   :  { %v36_v5 = vld [vmem:[%s1639_s0] sm:$0xff]  ;;  %v37_v6 = vld [vmem:[%s1639_s0 + $0x8] sm:$0xff]  ;;  %v64_v7 = vpack.c.bf16 %v61_v4, %v60_v2  ;;  %v39_v10 = vld [vmem:[%s1639_s0 + $0x18] sm:$0xff] }
   0x5   :  { %v1388_v8 = vpack.c.bf16 %v37_v6, %v36_v5  ;;  %1023 = vmatprep.subr.bf16.mxu0 %v65_v3 }
   0x6   :  { %1024 = vmatpush3.bf16.msra.mxu0 %v65_v3 }
   0x7   :  { %1027 = vmatprep.mubr.msk.bf16.mxu0 %vm73_vm0, %v1388_v8 }
   0x8   :  { %22 = vsyncpa [#allocation11], 0  ;;  %1025 = vmatprep.subr.bf16.mxu0 %v64_v7  ;;  %v40_v11 = vld [vmem:[%s1639_s0 + $0x20] sm:$0xff]  ;;  %v41_v12 = vld [vmem:[%s1639_s0 + $0x28] sm:$0xff]  ;;  %v1404_v13 = vpack.c.bf16 %v39_v10, %v38_v9  ;;  %vm151_vm1 = vcmask 130048   ;;  %vm272_vm2 = vcmask 523264  }
   0x9   :  { %v1406_v14 = vpack.c.bf16 %v41_v12, %v40_v11  ;;  %v42_v15 = vld [vmem:[%s1639_s0 + $0x30] sm:$0xff]  ;;  %v43_v16 = vld [vmem:[%s1639_s0 + $0x38] sm:$0xff]  ;;  %v974_v18 = vld [vmem:[%s1642_s3] ss:$0 sm:$0xff]  ;;  %vm1291_vm3 = vmmov 0   ;;  %vm610_vm4 = vcmask 64512  }
   0xa   :  { %1026 = vmatpush3.bf16.msra.mxu0 %v64_v7  ;;  %v1418_v17 = vpack.c.bf16 %v43_v16, %v42_v15  ;;  %vm683_vm8 = vcmask 122880  }
   0xd   :  { %1028 = vmatmul.mubr.msk.bf16.vlgmr.msra.gmra.mxu0 %vm73_vm0, %v1404_v13 }
   0xe   :  { %1031 = vmatprep.mubr.msk.bf16.mxu0 %vm73_vm0, %v1406_v14 }
  0x15   :  { %1032 = vmatmul.mubr.msk.bf16.gmra.mxu0 %vm73_vm0, %v1418_v17 }
  0xcd   :  { %v1029_v19 = vpop.f32.mrf.mxu0 }
  0xce   :  { %v129_v20 = vadd.f32 %v1029_v19, %v974_v18 }
  0xcf   :  { %v120_v21 = vpop.f32.mrf.mxu0 }
  0xd0   :  { %v121_v22 = vadd.f32 %v974_v18, %v120_v21  ;;  %v158_v23 = vsel %vm151_vm1, %v129_v20, -inf }
  0xd1   :  { %159 = vmax.xlane.f32.xlu1 %v158_v23  ;;  %v1030_v24 = vpop.f32.mrf.mxu0  ;;  %v44_v23 = vld [vmem:[%s1640_s1] sm:$0xff] }
  0xd2   :  { %v132_v25 = vadd.f32 %v1030_v24, %v974_v18  ;;  %v152_v26 = vsel %vm151_vm1, %v121_v22, -inf  ;;  %v45_v24 = vld [vmem:[%s1640_s1 + $0x8] sm:$0xff] }
  0xd3   :  { %v123_v27 = vpop.f32.mrf.mxu0  ;;  %153 = vmax.xlane.f32.xlu0 %v152_v26  ;;  %v1290_v26 = vmov 0.0  }
  0xd4   :  { %v124_v28 = vadd.f32 %v974_v18, %v123_v27  ;;  %v161_v29 = vsel %vm151_vm1, %v132_v25, -inf  ;;  %1035 = vmatprep.subr.bf16.mxu1 %v1290_v26  ;;  %1043 = vmatprep.mubr.msk.bf16.mxu1 %vm1291_vm3, %v1290_v26 }
  0xd5   :  { %162 = vmax.xlane.f32.xlu1 %v161_v29  ;;  %v1033_v30 = vpop.f32.mrf.mxu0  ;;  %1036 = vmatpush3.bf16.msra.mxu1 %v1418_v17 }
  0xd6   :  { %v155_v31 = vsel %vm151_vm1, %v124_v28, -inf  ;;  %v145_v35 = vadd.f32 %v1033_v30, %v974_v18  ;;  %1037 = vmatprep.subr.bf16.mxu1 %v1290_v26 }
  0xd7   :  { %v136_v32 = vpop.f32.mrf.mxu0  ;;  %156 = vmax.xlane.f32.xlu0 %v155_v31 }
  0xd8   :  { %v137_v33 = vadd.f32 %v974_v18, %v136_v32  ;;  %v170_v41 = vsel %vm151_vm1, %v145_v35, -inf }
  0xd9   :  { %v1034_v34 = vpop.f32.mrf.mxu0  ;;  %1038 = vmatpush3.bf16.msra.mxu1 %v1406_v14 }
  0xda   :  { %v164_v36 = vsel %vm151_vm1, %v137_v33, -inf  ;;  %v148_v39 = vadd.f32 %v1034_v34, %v974_v18  ;;  %1039 = vmatprep.subr.bf16.mxu1 %v1290_v26 }
  0xdb   :  { %v139_v37 = vpop.f32.mrf.mxu0  ;;  %165 = vmax.xlane.f32.xlu0 %v164_v36 }
  0xdc   :  { %v140_v38 = vadd.f32 %v974_v18, %v139_v37  ;;  %v173_v42 = vsel %vm151_vm1, %v148_v39, -inf }
  0xdd   :  { %1040 = vmatpush3.bf16.msra.mxu1 %v1404_v13 }
  0xde   :  { %v167_v40 = vsel %vm151_vm1, %v140_v38, -inf  ;;  %1041 = vmatprep.subr.bf16.mxu1 %v1290_v26 }
  0xdf   :  { %168 = vmax.xlane.f32.xlu1 %v167_v40  ;;  %171 = vmax.xlane.f32.xlu0 %v170_v41 }
  0xe1   :  { %1042 = vmatpush3.bf16.msra.mxu1 %v1388_v8 }
  0xe2   :  { %1063 = vmatprep.subr.bf16.mxu1 %v1290_v26 }
  0xe3   :  { %174 = vmax.xlane.f32.xlu1 %v173_v42 }
 0x15a   :  { %v160_v43 = vpop.xlane.xlu1 %159 }
 0x15b   :  { %v178_v44 = vsub.f32 %v129_v20, %v160_v43 }
 0x15c   :  { %v154_v45 = vpop.xlane.xlu0 %153 }
 0x15d   :  { %v188_v46 = vmul.f32 1.442695, %v178_v44  ;;  %v176_v47 = vsub.f32 %v121_v22, %v154_v45 }
 0x15e   :  { %v163_v48 = vpop.xlane.xlu1 %162 }
 0x15f   :  { %1116 = vpow2.f32 %v188_v46  ;;  %v184_v49 = vmul.f32 1.442695, %v176_v47  ;;  %v179_v50 = vsub.f32 %v132_v25, %v163_v48  ;;  %v56_v25 = vpack.c.bf16 %v45_v24, %v44_v23 }
 0x160   :  { %v157_v51 = vpop.xlane.xlu0 %156 }
 0x161   :  { %1118 = vpow2.f32 %v184_v49  ;;  %v190_v52 = vmul.f32 1.442695, %v179_v50  ;;  %v177_v53 = vsub.f32 %v124_v28, %v157_v51  ;;  %1055 = vmatprep.mubr.msk.bf16.mxu0 %vm272_vm2, %v56_v25  ;;  %v46_v51 = vld [vmem:[%s1640_s1 + $0x10] sm:$0xff] }
 0x163   :  { %1120 = vpow2.f32 %v190_v52  ;;  %v186_v54 = vmul.f32 1.442695, %v177_v53  ;;  %v47_v52 = vld [vmem:[%s1640_s1 + $0x18] sm:$0xff]  ;;  %v48_v53 = vld [vmem:[%s1640_s1 + $0x20] sm:$0xff] }
 0x164   :  { %v166_v55 = vpop.xlane.xlu0 %165 }
 0x165   :  { %1122 = vpow2.f32 %v186_v54  ;;  %v180_v56 = vsub.f32 %v137_v33, %v166_v55  ;;  %v49_v54 = vld [vmem:[%s1640_s1 + $0x28] sm:$0xff]  ;;  %v57_v55 = vpack.c.bf16 %v47_v52, %v46_v51 }
 0x167   :  { %v192_v57 = vmul.f32 1.442695, %v180_v56  ;;  %v58_v56 = vpack.c.bf16 %v49_v54, %v48_v53 }
 0x168   :  { %v169_v58 = vpop.xlane.xlu1 %168  ;;  %v172_v59 = vpop.xlane.xlu0 %171 }
 0x169   :  { %1124 = vpow2.f32 %v192_v57  ;;  %v181_v60 = vsub.f32 %v140_v38, %v169_v58  ;;  %v182_v61 = vsub.f32 %v145_v35, %v172_v59  ;;  %v50_v57 = vld [vmem:[%s1640_s1 + $0x30] sm:$0xff]  ;;  %v51_v58 = vld [vmem:[%s1640_s1 + $0x38] sm:$0xff] }
 0x16a   :  { %v59_v59 = vpack.c.bf16 %v51_v58, %v50_v57 }
 0x16b   :  { %v194_v62 = vmul.f32 1.442695, %v181_v60  ;;  %v196_v63 = vmul.f32 1.442695, %v182_v61  ;;  %v555_v61 = vld [vmem:[%s1643_s4 + $0x10] sm:$0xff] }
 0x16c   :  { %v1433_v0 = vpop.eup %1116  ;;  %v175_v1 = vpop.xlane.xlu1 %174 }
 0x16d   :  { %1126 = vpow2.f32 %v194_v62  ;;  %v183_v2 = vsub.f32 %v148_v39, %v175_v1  ;;  %v206_v3 = vsel %vm151_vm1, %v1433_v0, 0.0  ;;  %v556_v62 = vld [vmem:[%s1643_s4 + $0x18] sm:$0xff]  ;;  %v554_v1 = vld [vmem:[%s1643_s4 + $0x8] sm:$0xff] }
 0x16e   :  { %v1119_v4 = vpop.eup %1118  ;;  %1128 = vpow2.f32 %v196_v63  ;;  %207 = vadd.xlane.f32.xlu0 %v206_v3  ;;  %v558_v63 = vpack.c.bf16 %v556_v62, %v555_v61 }
 0x16f   :  { %v198_v5 = vmul.f32 1.442695, %v183_v2  ;;  %v200_v9 = vsel %vm151_vm1, %v1119_v4, 0.0 }
 0x170   :  { %v1121_v6 = vpop.eup %1120 }
 0x171   :  { %1130 = vpow2.f32 %v198_v5  ;;  %v209_v7 = vsel %vm151_vm1, %v1121_v6, 0.0 }
 0x172   :  { %v1123_v10 = vpop.eup %1122  ;;  %210 = vadd.xlane.f32.xlu1 %v209_v7  ;;  %201 = vadd.xlane.f32.xlu0 %v200_v9 }
 0x173   :  { %v203_v11 = vsel %vm151_vm1, %v1123_v10, 0.0 }
 0x176   :  { %v1125_v12 = vpop.eup %1124  ;;  %204 = vadd.xlane.f32.xlu1 %v203_v11 }
 0x177   :  { %v212_v15 = vsel %vm151_vm1, %v1125_v12, 0.0 }
 0x178   :  { %213 = vadd.xlane.f32.xlu0 %v212_v15 }
 0x17a   :  { %v1127_v16 = vpop.eup %1126 }
 0x17b   :  { %v1129_v18 = vpop.eup %1128  ;;  %v215_v19 = vsel %vm151_vm1, %v1127_v16, 0.0 }
 0x17c   :  { %216 = vadd.xlane.f32.xlu1 %v215_v19  ;;  %v218_v20 = vsel %vm151_vm1, %v1129_v18, 0.0 }
 0x17d   :  { %219 = vadd.xlane.f32.xlu0 %v218_v20 }
 0x17e   :  { %v1131_v21 = vpop.eup %1130 }
 0x17f   :  { %v221_v22 = vsel %vm151_vm1, %v1131_v21, 0.0 }
 0x180   :  { %222 = vadd.xlane.f32.xlu1 %v221_v22 }
 0x1f7   :  { %v208_v27 = vpop.xlane.xlu0 %207 }
 0x1fb   :  { %v211_v28 = vpop.xlane.xlu1 %210  ;;  %v202_v29 = vpop.xlane.xlu0 %201 }
 0x1fc   :  { %1132 = vrcp.f32 %v202_v29  ;;  %v985_v29 = vld [vmem:[%s1644_s5] ss:$0 sm:$0xff] }
 0x1fd   :  { %1134 = vrcp.f32 %v211_v28 }
 0x1ff   :  { %v205_v17 = vpop.xlane.xlu1 %204 }
 0x200   :  { %1136 = vrcp.f32 %v205_v17 }
 0x201   :  { %v214_v30 = vpop.xlane.xlu0 %213  ;;  %1138 = vrcp.f32 %v208_v27 }
 0x202   :  { %1140 = vrcp.f32 %v214_v30 }
 0x205   :  { %v217_v14 = vpop.xlane.xlu1 %216 }
 0x206   :  { %1142 = vrcp.f32 %v217_v14  ;;  %v220_v31 = vpop.xlane.xlu0 %219 }
 0x207   :  { %1144 = vrcp.f32 %v220_v31 }
 0x209   :  { %v223_v13 = vpop.xlane.xlu1 %222  ;;  %v1133_v32 = vpop.eup %1132 }
 0x20a   :  { %1146 = vrcp.f32 %v223_v13  ;;  %v1135_v8 = vpop.eup %1134  ;;  %v1462_v34 = vmul.f32 %v1133_v32, %v1119_v4 }
 0x20b   :  { %v1468_v38 = vmul.f32 %v1135_v8, %v1121_v6 }
 0x20d   :  { %v1137_v33 = vpop.eup %1136 }
 0x20e   :  { %v1464_v35 = vmul.f32 %v1137_v33, %v1123_v10  ;;  %v1139_v36 = vpop.eup %1138 }
 0x20f   :  { %v1141_v39 = vpop.eup %1140  ;;  %v1471_v40 = vmul.f32 %v1139_v36, %v1433_v0  ;;  %v553_v0 = vld [vmem:[%s1643_s4] sm:$0xff] }
 0x210   :  { %v305_v37 = vpack.c.bf16 %v1464_v35, %v1462_v34  ;;  %v1477_v45 = vmul.f32 %v1141_v39, %v1125_v12  ;;  %v557_v2 = vpack.c.bf16 %v554_v1, %v553_v0 }
 0x211   :  { %v306_v42 = vpack.c.bf16 %v1468_v38, %v1471_v40 }
 0x212   :  { %309 = vxpose.xlu0.c.b16.start [1/4] (short) (narrow) %v305_v37, 16 }
 0x213   :  { %v1143_v41 = vpop.eup %1142 }
 0x214   :  { %v1475_v43 = vmul.f32 %v1143_v41, %v1127_v16  ;;  %v1145_v44 = vpop.eup %1144 }
 0x215   :  { %v1481_v48 = vmul.f32 %v1145_v44, %v1129_v18 }
 0x216   :  { %310 = vxpose.xlu0.c.b16.cont [2/4] (short) (narrow) %v306_v42, 16  ;;  %v307_v47 = vpack.c.bf16 %v1475_v43, %v1477_v45 }
 0x217   :  { %v1147_v46 = vpop.eup %1146 }
 0x218   :  { %v1483_v49 = vmul.f32 %v1147_v46, %v1131_v21 }
 0x21a   :  { %311 = vxpose.xlu0.c.b16.cont [3/4] (short) (narrow) %v307_v47, 16  ;;  %v308_v50 = vpack.c.bf16 %v1483_v49, %v1481_v48 }
 0x21c   :  { %1047 = vmatprep.subr.bf16.mxu0 %v308_v50 }
 0x21d   :  { %1048 = vmatpush3.bf16.msra.mxu0 %v308_v50 }
 0x21e   :  { %312 = vxpose.xlu0.c.b16.end [4/4] (short) (narrow) %v308_v50, 16  ;;  %1049 = vmatprep.subr.bf16.mxu0 %v307_v47 }
 0x221   :  { %1050 = vmatpush3.bf16.msra.mxu0 %v307_v47 }
 0x222   :  { %1051 = vmatprep.subr.bf16.mxu0 %v306_v42 }
 0x225   :  { %1052 = vmatpush3.bf16.msra.mxu0 %v306_v42 }
 0x226   :  { %1053 = vmatprep.subr.bf16.mxu0 %v305_v37 }
 0x229   :  { %1054 = vmatpush3.bf16.msra.mxu0 %v305_v37 }
 0x22a   :  { %1075 = vmatprep.subr.bf16.mxu0 %v1290_v26 }
 0x22c   :  { %1056 = vmatmul.mubr.msk.bf16.vlgmr.msra.gmra.mxu0 %vm272_vm2, %v57_v55 }
 0x22d   :  { %1059 = vmatprep.mubr.msk.bf16.mxu0 %vm272_vm2, %v58_v56  ;;  %1076 = vmatpush3.bf16.msra.mxu0 %v558_v63 }
 0x22e   :  { %1077 = vmatprep.subr.bf16.mxu0 %v1290_v26 }
 0x231   :  { %1078 = vmatpush3.bf16.msra.mxu0 %v557_v2 }
 0x232   :  { %1089 = vmatprep.subr.bf16.mxu0 %v1290_v26 }
 0x234   :  { %1060 = vmatmul.mubr.msk.bf16.gmra.mxu0 %vm272_vm2, %v59_v59 }
 0x235   :  { %1079 = vmatprep.mubr.msk.bf16.mxu0 %vm1291_vm3, %v1290_v26 }
 0x274   :  { %v317_v60 = vpop.trf.xlu0 }
 0x275   :  { %1044 = vmatmul.mubr.msk.bf16.vlgmr.msra.gmra.mxu1 %vm272_vm2, %v317_v60 }
 0x276   :  { %1071 = vmatprep.mubr.msk.bf16.mxu1 %vm1291_vm3, %v1290_v26 }
 0x2ec   :  { %v1057_v3 = vpop.f32.mrf.mxu0 }
 0x2ee   :  { %v415_v4 = vpop.f32.mrf.mxu0 }
 0x2f0   :  { %v1058_v5 = vpop.f32.mrf.mxu0 }
 0x2f1   :  { %v447_v16 = vpack.c.bf16 %v1058_v5, %v1057_v3 }
 0x2f2   :  { %v418_v6 = vpop.f32.mrf.mxu0 }
 0x2f3   :  { %v446_v18 = vpack.c.bf16 %v418_v6, %v415_v4 }
 0x2f4   :  { %v1061_v7 = vpop.f32.mrf.mxu0 }
 0x2f6   :  { %v431_v9 = vpop.f32.mrf.mxu0 }
 0x2f8   :  { %v1062_v10 = vpop.f32.mrf.mxu0 }
 0x2f9   :  { %v449_v11 = vpack.c.bf16 %v1062_v10, %v1061_v7  ;;  %v275_v7 = vlaneseq }
 0x2fa   :  { %v434_v12 = vpop.f32.mrf.mxu0 }
 0x2fb   :  { %1064 = vmatpush3.bf16.msra.mxu1 %v449_v11  ;;  %v448_v15 = vpack.c.bf16 %v434_v12, %v431_v9  ;;  %v1556_v9 = vshrl.u32 %v275_v7, 7 }
 0x2fc   :  { %1065 = vmatprep.subr.bf16.mxu1 %v1290_v26 }
 0x2fd   :  { %v543_v10 = vsub.s32 0, %v1556_v9 }
 0x2ff   :  { %1066 = vmatpush3.bf16.msra.mxu1 %v448_v15 }
 0x300   :  { %1067 = vmatprep.subr.bf16.mxu1 %v1290_v26 }
 0x303   :  { %1068 = vmatpush3.bf16.msra.mxu1 %v447_v16 }
 0x304   :  { %1069 = vmatprep.subr.bf16.mxu1 %v1290_v26 }
 0x307   :  { %1070 = vmatpush3.bf16.msra.mxu1 %v446_v18 }
 0x308   :  { %1083 = vmatprep.subr.bf16.mxu1 %v1290_v26 }
 0x30a   :  { %1072 = vmatmul.mubr.msk.bf16.vlgmr.msra.gmra.mxu1 %vm272_vm2, %v317_v60 }
 0x30b   :  { %1085 = vmatprep.mubr.msk.bf16.mxu1 %vm1291_vm3, %v1290_v26 }
 0x335   :  { %v362_v19 = vpop.f32.mrf.mxu1 }
 0x336   :  { %547 = vst.msk [vmem:[#allocation6] sm:$0xff] %vm73_vm0, %v362_v19 }
 0x337   :  { %v1045_v20 = vpop.f32.mrf.mxu1 }
 0x339   :  { %v365_v21 = vpop.f32.mrf.mxu1 }
 0x33a   :  { %548 = vst.msk [vmem:[#allocation6 + $0x8] sm:$0xff] %vm73_vm0, %v365_v21  ;;  %v551_v22 = vpack.c.bf16 %v365_v21, %v362_v19 }
 0x33b   :  { %v1046_v23 = vpop.f32.mrf.mxu1 }
 0x33c   :  { %1080 = vmatmul.mubr.msk.bf16.vlgmr.msra.gmra.mxu0 %vm73_vm0, %v551_v22  ;;  %1084 = vmatpush3.bf16.msra.mxu1 %v551_v22 }
 0x33d   :  { %1091 = vmatprep.mubr.msk.bf16.mxu0 %vm1291_vm3, %v1290_v26  ;;  %1095 = vmatprep.subr.bf16.mxu1 %v1290_v26 }
 0x3ca   :  { %v1541_v24 = vpop.f32.mrf.mxu1 }
 0x3cb   :  { %v491_v36 = vsel %vm151_vm1, %v1541_v24, 0.0 }
 0x3cc   :  { %v1073_v25 = vpop.f32.mrf.mxu1 }
 0x3ce   :  { %v1543_v27 = vpop.f32.mrf.mxu1 }
 0x3cf   :  { %v494_v37 = vsel %vm151_vm1, %v1543_v27, 0.0 }
 0x3d0   :  { %v1074_v28 = vpop.f32.mrf.mxu1 }
 0x3fc   :  { %v603_v17 = vpop.f32.mrf.mxu0 }
 0x3fd   :  { %v604_v30 = vadd.f32 %v985_v29, %v603_v17 }
 0x3fe   :  { %v1081_v14 = vpop.f32.mrf.mxu0 }
 0x3ff   :  { %v611_v31 = vsel %vm610_vm4, %v604_v30, -inf }
 0x400   :  { %612 = vmax.xlane.f32.xlu1 %v611_v31  ;;  %v606_v13 = vpop.f32.mrf.mxu0 }
 0x401   :  { %v607_v32 = vadd.f32 %v985_v29, %v606_v13 }
 0x402   :  { %v1082_v8 = vpop.f32.mrf.mxu0 }
 0x403   :  { %v614_v33 = vsel %vm610_vm4, %v607_v32, -inf }
 0x404   :  { %615 = vmax.xlane.f32.xlu1 %v614_v33 }
 0x408   :  { %492 = vadd.xlane.f32.xlu1 %v491_v36 }
 0x40c   :  { %495 = vadd.xlane.f32.xlu1 %v494_v37 }
 0x489   :  { %v613_v39 = vpop.xlane.xlu1 %612 }
 0x48a   :  { %v617_v41 = vsub.f32 %v604_v30, %v613_v39 }
 0x48c   :  { %v619_v42 = vmul.f32 1.442695, %v617_v41 }
 0x48d   :  { %v616_v44 = vpop.xlane.xlu1 %615 }
 0x48e   :  { %1148 = vpow2.f32 %v619_v42  ;;  %v618_v46 = vsub.f32 %v607_v32, %v616_v44 }
 0x490   :  { %v621_v47 = vmul.f32 1.442695, %v618_v46 }
 0x491   :  { %v493_v54 = vpop.xlane.xlu1 %492 }
 0x492   :  { %1150 = vpow2.f32 %v621_v47  ;;  %v499_v55 = vand.u32 2147483647, %v493_v54  ;;  %vm497_vm5 = vcmp.gt.f32.partialorder %v493_v54, 0.0 }
 0x494   :  { %v501_v57 = vadd.f32 1e-12, %v499_v55 }
 0x495   :  { %v496_v56 = vpop.xlane.xlu1 %495 }
 0x496   :  { %v500_v58 = vand.u32 2147483647, %v496_v56  ;;  %1152 = vrsqrt.f32 %v501_v57  ;;  %vm498_vm6 = vcmp.gt.f32.partialorder %v496_v56, 0.0 }
 0x498   :  { %v502_v59 = vadd.f32 1e-12, %v500_v58 }
 0x49a   :  { %1154 = vrsqrt.f32 %v502_v59 }
 0x49b   :  { %v1149_v50 = vpop.eup %1148 }
 0x49c   :  { %v623_v51 = vsel %vm610_vm4, %v1149_v50, 0.0 }
 0x49d   :  { %624 = vadd.xlane.f32.xlu1 %v623_v51 }
 0x49f   :  { %v1151_v52 = vpop.eup %1150 }
 0x4a0   :  { %v626_v53 = vsel %vm610_vm4, %v1151_v52, 0.0 }
 0x4a1   :  { %627 = vadd.xlane.f32.xlu1 %v626_v53 }
 0x4a3   :  { %v1153_v60 = vpop.eup %1152 }
 0x4a4   :  { %v505_v61 = vsel %vm497_vm5, %v1153_v60, 0.0 }
 0x4a5   :  { %v507_v12 = vmul.f32 %v505_v61, %v1541_v24 }
 0x4a7   :  { %v1155_v62 = vpop.eup %1154 }
 0x4a8   :  { %v506_v63 = vsel %vm498_vm6, %v1155_v62, 0.0 }
 0x4a9   :  { %v508_v15 = vmul.f32 %v506_v63, %v1543_v27 }
 0x4d4   :  { %509 = vxpose.xlu1.b32.start [1/2] (short) (narrow) %v505_v61, 8 }
 0x4d8   :  { %510 = vxpose.xlu1.b32.end [2/2] (short) (narrow) %v506_v63, 8 }
 0x526   :  { %v625_v0 = vpop.xlane.xlu1 %624 }
 0x527   :  { %1156 = vrcp.f32 %v625_v0 }
 0x52a   :  { %v628_v1 = vpop.xlane.xlu1 %627 }
 0x52b   :  { %1158 = vrcp.f32 %v628_v1 }
 0x534   :  { %v1157_v2 = vpop.eup %1156 }
 0x535   :  { %v631_v3 = vmul.f32 %v1157_v2, %v1149_v50 }
 0x537   :  { %633 = vxpose.xlu1.b32.start [1/2] (short) (narrow) %v631_v3, 8 }
 0x538   :  { %v1159_v4 = vpop.eup %1158 }
 0x539   :  { %v632_v5 = vmul.f32 %v1159_v4, %v1151_v52 }
 0x53b   :  { %634 = vxpose.xlu1.b32.end [2/2] (short) (narrow) %v632_v5, 8  ;;  %v685_v6 = vpack.c.bf16 %v632_v5, %v631_v3 }
 0x53d   :  { %686 = vxpose.xlu0.c.b16.start.end [1/1] (short) (narrow) %v685_v6, 16  ;;  %1090 = vmatpush3.bf16.msra.mxu0 %v685_v6 }
 0x550   :  { %v525_v11 = vpop.trf.xlu1 }
 0x551   :  { %v544_v16 = vrot.slane %v525_v11, %v543_v10 }
 0x553   :  { %v545_v18 = vmul.f32 %v544_v16, %v507_v12  ;;  %v546_v19 = vmul.f32 %v544_v16, %v508_v15 }
 0x555   :  { %549 = vst.msk [vmem:[#allocation7] sm:$0xff] %vm151_vm1, %v545_v18  ;;  %550 = vst.msk [vmem:[#allocation7 + $0x8] sm:$0xff] %vm151_vm1, %v546_v19  ;;  %v552_v20 = vpack.c.bf16 %v546_v19, %v545_v18 }
 0x557   :  { %1092 = vmatmul.mubr.msk.bf16.vlgmr.msra.gmra.mxu0 %vm151_vm1, %v552_v20 }
 0x59f   :  { %v694_v21 = vpop.trf.xlu0 }
 0x5a0   :  { %1086 = vmatmul.mubr.msk.bf16.vlgmr.msra.gmra.mxu1 %vm151_vm1, %v694_v21 }
 0x5a1   :  { %1097 = vmatprep.mubr.msk.bf16.mxu1 %vm1291_vm3, %v1290_v26 }
 0x5b3   :  { %v649_v8 = vpop.trf.xlu1 }
 0x5b4   :  { %665 = vst.msk [vmem:[#allocation9] sm:$0xff] %vm151_vm1, %v649_v8  ;;  %v666_v33 = vsel %vm151_vm1, %v649_v8, -inf }
 0x617   :  { %v782_v22 = vpop.f32.mrf.mxu0 }
 0x619   :  { %v1093_v23 = vpop.f32.mrf.mxu0 }
 0x61b   :  { %v785_v24 = vpop.f32.mrf.mxu0 }
 0x61c   :  { %v789_v25 = vpack.c.bf16 %v785_v24, %v782_v22 }
 0x61d   :  { %v1094_v27 = vpop.f32.mrf.mxu0 }
 0x61e   :  { %1096 = vmatpush3.bf16.msra.mxu1 %v789_v25 }
 0x621   :  { %1098 = vmatmul.mubr.msk.bf16.vlgmr.msra.gmra.mxu1 %vm151_vm1, %v694_v21 }
 0x660   :  { %v739_v28 = vpop.f32.mrf.mxu1 }
 0x661   :  { %876 = vst.msk [vmem:[%s1651_s12] sm:$0xff] %vm73_vm0, %v739_v28  ;;  %s1292_s12 = smov [#allocation7]  }
 0x662   :  { %v1087_v29 = vpop.f32.mrf.mxu1  ;;  %s917_s19 = sshll.u32 %s1292_s12, 4  ;;  %s918_s19 = int_to_ptr.vmem [resolvable:$true] %s917_s19 }
 0x663   :  { %s1162_s20 = scalar_lea.vmem %s918_s19, 256  ;;  %p1167_p1 = scmp.lt.s32.totalorder %s918_s19, %s918_s19 }
 0x664   :  { %v742_v17 = vpop.f32.mrf.mxu1  ;;  %p1163_p0 = scmp.ne.s32.totalorder %s918_s19, %s1162_s20  ;;  %p1168_p2 = scmp.lt.s32.totalorder %s1162_s20, %s1162_s20 }
 0x666   :  { %v1088_v30 = vpop.f32.mrf.mxu1  ;;  %p1169_p3 = por %p1168_p2, %p1167_p1 }
 0x668   :  { %p1170_p4 = pnand %p1169_p3, %p1163_p0 }
 0x6e1   :  { %v1574_v14 = vpop.f32.mrf.mxu1 }
 0x6e2   :  { %v830_v26 = vsel %vm610_vm4, %v1574_v14, 0.0 }
 0x6e3   :  { %831 = vadd.xlane.f32.xlu0 %v830_v26  ;;  %v1099_v31 = vpop.f32.mrf.mxu1 }
 0x6e5   :  { %v827_v13 = vpop.f32.mrf.mxu1 }
 0x6e7   :  { %v1100_v32 = vpop.f32.mrf.mxu1 }
 0x710   :  { %240 = vxpose.xlu0.b32.start [1/8] (short) (narrow) %v1462_v34, 16  ;;  %v667_v34 = vrot.slane %v666_v33, 4 }
 0x712   :  { %v668_v36 = vmax.f32 %v666_v33, %v667_v34 }
 0x714   :  { %241 = vxpose.xlu0.b32.cont [2/8] (short) (narrow) %v1464_v35, 16  ;;  %v669_v35 = vrot.slane %v668_v36, 2 }
 0x716   :  { %v670_v37 = vmax.f32 %v668_v36, %v669_v35 }
 0x718   :  { %242 = vxpose.xlu0.b32.cont [3/8] (short) (narrow) %v1471_v40, 16  ;;  %v671_v40 = vrot.slane %v670_v37, 1 }
 0x71a   :  { %v672_v39 = vmax.f32 %v670_v37, %v671_v40 }
 0x71c   :  { %243 = vxpose.xlu0.b32.cont [4/8] (short) (narrow) %v1468_v38, 16  ;;  %vm673_vm7 = vcmp.eq.f32.partialorder %v649_v8, %v672_v39  ;;  %v278_v38 = vcvt.s32.f32 %v1556_v9 }
 0x720   :  { %244 = vxpose.xlu0.b32.cont [5/8] (short) (narrow) %v1477_v45, 16 }
 0x724   :  { %245 = vxpose.xlu0.b32.cont [6/8] (short) (narrow) %v1475_v43, 16  ;;  %v674_v43 = vsel %vm673_vm7, %v278_v38, 8.0 }
 0x725   :  { %v675_v45 = vsel %vm151_vm1, %v674_v43, inf }
 0x728   :  { %246 = vxpose.xlu0.b32.cont [7/8] (short) (narrow) %v1481_v48, 16  ;;  %v676_v48 = vrot.slane %v675_v45, 4 }
 0x72a   :  { %v677_v41 = vmin.f32 %v675_v45, %v676_v48 }
 0x72c   :  { %247 = vxpose.xlu0.b32.end [8/8] (short) (narrow) %v1483_v49, 16  ;;  %v678_v42 = vrot.slane %v677_v41, 2 }
 0x72e   :  { %v679_v49 = vmin.f32 %v677_v41, %v678_v42 }
 0x730   :  { %v680_v44 = vrot.slane %v679_v49, 1 }
 0x732   :  { %v681_v46 = vmin.f32 %v679_v49, %v680_v44 }
 0x734   :  { %v1103_v47 = vtrunc.f32 %v681_v46 }
 0x736   :  { %v1104_v51 = vcvt.f32.s32 %v1103_v47 }
 0x738   :  { %684 = vst.msk [vmem:[#allocation10] sm:$0x1] %vm683_vm8, %v1104_v51 }
 0x76c   :  { %v832_v50 = vpop.xlane.xlu0 %831 }
 0x76d   :  { %v834_v52 = vand.u32 2147483647, %v832_v50  ;;  %vm833_vm9 = vcmp.gt.f32.partialorder %v832_v50, 0.0 }
 0x76f   :  { %v835_v53 = vadd.f32 1e-12, %v834_v52 }
 0x771   :  { %1160 = vrsqrt.f32 %v835_v53 }
 0x77e   :  { %v1161_v54 = vpop.eup %1160 }
 0x77f   :  { %v1592_v55 = vsel %vm833_vm9, %v1161_v54, 0.0 }
 0x780   :  { %839 = vxpose.xlu1.b32.start.end [1/1] (short) (narrow) %v1592_v55, 8 }
 0x781   :  { %1173 = shalt.err (!%p1170_p4)
}
 0x782   :  { %s1293_s21 = smov 128   ;;  %s1294_s2 = smov 8  }
 0x783   :  { %923 = dma.vmem_to_hbm [thread:$0]  %s918_s19, 256, %s1648_s9, [#allocation8], %s1293_s21, %s1293_s21, %s1294_s2  }
 0x784   :  { %s1295_s24 = smov [#allocation9]   ;;  %s1296_s26 = smov [#allocation10]  }
 0x785   :  { %s930_s25 = sshll.u32 %s1295_s24, 4  ;;  %s940_s27 = sshll.u32 %s1296_s26, 4  ;;  %s931_s25 = int_to_ptr.vmem [resolvable:$true] %s930_s25  ;;  %s941_s27 = int_to_ptr.vmem [resolvable:$true] %s940_s27 }
 0x786   :  { %s1182_s28 = scalar_lea.vmem %s931_s25, 128  ;;  %p1187_p6 = scmp.lt.s32.totalorder %s931_s25, %s931_s25 }
 0x787   :  { %p1183_p5 = scmp.ne.s32.totalorder %s931_s25, %s1182_s28  ;;  %p1188_p7 = scmp.lt.s32.totalorder %s1182_s28, %s1182_s28 }
 0x789   :  { %p1189_p8 = por %p1188_p7, %p1187_p6 }
 0x78b   :  { %p1190_p9 = pnand %p1189_p8, %p1183_p5 }
 0x78d   :  { %1193 = shalt.err (!%p1190_p9)
}
 0x78e   :  { %933 = dma.vmem_to_hbm [thread:$0]  %s931_s25, 128, %s1649_s10, [#allocation8]  }
 0x78f   :  { %s1202_s14 = scalar_lea.vmem %s941_s27, 16  ;;  %s1206_s9 = scalar_lea.vmem %s941_s27, 32 }
 0x790   :  { %p1203_p10 = scmp.ne.s32.totalorder %s941_s27, %s1202_s14  ;;  %p1207_p11 = scmp.lt.s32.totalorder %s941_s27, %s941_s27 }
 0x791   :  { %p1208_p12 = scmp.lt.s32.totalorder %s1206_s9, %s1202_s14 }
 0x793   :  { %p1209_p13 = por %p1208_p12, %p1207_p11 }
 0x795   :  { %p1210_p0 = pnand %p1209_p13, %p1203_p10 }
 0x797   :  { %1213 = shalt.err (!%p1210_p0)
}
 0x798   :  { %943 = dma.vmem_to_hbm [thread:$0]  %s941_s27, 16, %s1650_s11, [#allocation11]   ;;  %v256_v56 = vpop.trf.xlu0 }
 0x799   :  { %s1297_s0 = smov [#allocation2]   ;;  %273 = vst.msk [vmem:[#allocation2] sm:$0xff] %vm272_vm2, %v256_v56  ;;  %v280_v57 = vsel %vm272_vm2, %v256_v56, -inf }
 0x79a   :  { %s883_s3 = sshll.u32 %s1297_s0, 4  ;;  %s884_s3 = int_to_ptr.vmem [resolvable:$true] %s883_s3 }
 0x79b   :  { %s1222_s10 = scalar_lea.vmem %s884_s3, 256  ;;  %p1227_p2 = scmp.lt.s32.totalorder %s884_s3, %s884_s3 }
 0x79c   :  { %v257_v58 = vpop.trf.xlu0  ;;  %p1223_p1 = scmp.ne.s32.totalorder %s884_s3, %s1222_s10  ;;  %p1228_p3 = scmp.lt.s32.totalorder %s1222_s10, %s1222_s10 }
 0x79d   :  { %274 = vst.msk [vmem:[#allocation2 + $0x8] sm:$0xff] %vm272_vm2, %v257_v58  ;;  %v281_v59 = vsel %vm272_vm2, %v257_v58, -inf }
 0x79e   :  { %v282_v60 = vmax.f32 %v280_v57, %v281_v59  ;;  %p1229_p4 = por %p1228_p3, %p1227_p2 }
 0x7a0   :  { %p1230_p5 = pnand %p1229_p4, %p1223_p1 }
 0x7a2   :  { %1233 = shalt.err (!%p1230_p5)
}
 0x7a3   :  { %889 = dma.vmem_to_hbm [thread:$0]  %s884_s3, 256, %s1645_s6, [#allocation3], %s1293_s21, %s1293_s21, %s1294_s2   ;;  %v283_v61 = vrot.slane %v282_v60, 4  ;;  %v277_v0 = vadd.s32 8, %v1556_v9  ;;  %vm303_vm12 = vcmask 516096  }
 0x7a4   :  { %s1298_s6 = smov [#allocation4]   ;;  %s1299_s17 = smov [#allocation6]  }
 0x7a5   :  { %v284_v62 = vmax.f32 %v282_v60, %v283_v61  ;;  %v279_v3 = vcvt.s32.f32 %v277_v0  ;;  %s896_s4 = sshll.u32 %s1298_s6, 4  ;;  %s905_s5 = sshll.u32 %s1299_s17, 4  ;;  %s897_s4 = int_to_ptr.vmem [resolvable:$true] %s896_s4  ;;  %s906_s5 = int_to_ptr.vmem [resolvable:$true] %s905_s5 }
 0x7a6   :  { %s1242_s18 = scalar_lea.vmem %s897_s4, 16  ;;  %s1246_s12 = scalar_lea.vmem %s897_s4, 32 }
 0x7a7   :  { %v285_v63 = vrot.slane %v284_v62, 2  ;;  %p1243_p6 = scmp.ne.s32.totalorder %s897_s4, %s1242_s18  ;;  %p1247_p7 = scmp.lt.s32.totalorder %s897_s4, %s897_s4 }
 0x7a8   :  { %p1248_p8 = scmp.lt.s32.totalorder %s1246_s12, %s1242_s18 }
 0x7a9   :  { %v286_v1 = vmax.f32 %v284_v62, %v285_v63 }
 0x7aa   :  { %p1249_p9 = por %p1248_p8, %p1247_p7 }
 0x7ab   :  { %v287_v2 = vrot.slane %v286_v1, 1 }
 0x7ac   :  { %p1250_p10 = pnand %p1249_p9, %p1243_p6 }
 0x7ad   :  { %v288_v4 = vmax.f32 %v286_v1, %v287_v2 }
 0x7af   :  { %vm289_vm10 = vcmp.eq.f32.partialorder %v256_v56, %v288_v4  ;;  %vm290_vm11 = vcmp.eq.f32.partialorder %v257_v58, %v288_v4 }
 0x7b0   :  { %v291_v5 = vsel %vm289_vm10, %v278_v38, 16.0  ;;  %v292_v6 = vsel %vm290_vm11, %v279_v3, 16.0 }
 0x7b1   :  { %v293_v7 = vsel %vm272_vm2, %v291_v5, inf  ;;  %v294_v11 = vsel %vm272_vm2, %v292_v6, inf }
 0x7b2   :  { %v295_v12 = vmin.f32 %v293_v7, %v294_v11 }
 0x7b4   :  { %v296_v15 = vrot.slane %v295_v12, 4 }
 0x7b6   :  { %v297_v16 = vmin.f32 %v295_v12, %v296_v15 }
 0x7b8   :  { %v298_v18 = vrot.slane %v297_v16, 2 }
 0x7ba   :  { %v299_v19 = vmin.f32 %v297_v16, %v298_v18 }
 0x7bc   :  { %v300_v20 = vrot.slane %v299_v19, 1 }
 0x7be   :  { %v301_v21 = vmin.f32 %v299_v19, %v300_v20 }
 0x7c0   :  { %v1101_v22 = vtrunc.f32 %v301_v21 }
 0x7c2   :  { %v1102_v23 = vcvt.f32.s32 %v1101_v22 }
 0x7c4   :  { %304 = vst.msk [vmem:[#allocation4] sm:$0x1] %vm303_vm12, %v1102_v23 }
 0x7c5   :  { %1253 = shalt.err (!%p1250_p10)
}
 0x7c6   :  { %899 = dma.vmem_to_hbm [thread:$0]  %s897_s4, 16, %s1646_s7, [#allocation5]  }
 0x7c7   :  { %s1262_s22 = scalar_lea.vmem %s906_s5, 256  ;;  %p1267_p12 = scmp.lt.s32.totalorder %s906_s5, %s906_s5 }
 0x7c8   :  { %p1263_p11 = scmp.ne.s32.totalorder %s906_s5, %s1262_s22  ;;  %p1268_p13 = scmp.lt.s32.totalorder %s1262_s22, %s1262_s22 }
 0x7ca   :  { %p1269_p0 = por %p1268_p13, %p1267_p12 }
 0x7cc   :  { %p1270_p1 = pnand %p1269_p0, %p1263_p11 }
 0x7ce   :  { %1273 = shalt.err (!%p1270_p1)
}
 0x7cf   :  { %911 = dma.vmem_to_hbm [thread:$0]  %s906_s5, 256, %s1647_s8, [#allocation5], %s1293_s21, %s1293_s21, %s1294_s2   ;;  %v838_v25 = vmul.f32 %v1592_v55, %v1574_v14 }
 0x7fc   :  { %v855_v24 = vpop.trf.xlu1 }
 0x7fd   :  { %v874_v27 = vrot.slane %v855_v24, %v543_v10 }
 0x7ff   :  { %v875_v28 = vmul.f32 %v874_v27, %v838_v25 }
 0x801   :  { %877 = vst.msk [vmem:[%s1652_s13] sm:$0xff] %vm610_vm4, %v875_v28 }
 0x802   :  { %1282 = dma.done.wait [#allocation3], 256  }
 0x803   :  { %1283 = vsyncadd [#allocation3], 4294967040 }
 0x804   :  { %1284 = dma.done.wait [#allocation5], 272  }
 0x805   :  { %1285 = vsyncadd [#allocation5], 4294967024 }
 0x806   :  { %1286 = dma.done.wait [#allocation8], 384  }
 0x807   :  { %1287 = vsyncadd [#allocation8], 4294966912 }
 0x808   :  { %1288 = dma.done.wait [#allocation11], 16  }
 0x809   :  { %1289 = vsyncadd [#allocation11], 4294967280 }
 0x80a   :  { %970 = vsyncpa [#allocation3], 1 }
 0x80b   :  { %971 = vsyncpa [#allocation5], 1 }
 0x80c   :  { %972 = vsyncpa [#allocation8], 1 }
 0x80d   :  { %973 = vsyncpa [#allocation11], 1 }

</bundles_post_ra>
